<compile_context>
chip_gen: v7x
topology: tpu7x:2x2x1
jax: 0.10.0
libtpu: 0.0.40
codegen_flags: <defaults>
</compile_context>

<pallas_src>
import jax
import jax.numpy as jnp
from jax.experimental import pallas as pl
from jax.experimental.pallas import tpu as pltpu

INPUT_SIZE = 784
HIDDEN = 50
NUM_CLASSES = 10
LANE_PAD = 128  # pad hidden / class feature dims to one full 128-lane width


def _fcnn_kernel(x_ref, w1_ref, b1_ref, w2_ref, b2_ref, o_ref):
    # x_ref : (TB, 784)      w1_ref: (784, 128)   b1_ref: (1, 128)
    # w2_ref: (128, 128)     b2_ref: (1, 128)     o_ref : (TB, 128)
    # Cast x to the weight dtype *inside* the kernel (free VPU work under the
    # DMA) rather than in the wrapper (which would cost an extra HBM pass).
    x = x_ref[...].astype(w1_ref.dtype)
    h = jnp.dot(x, w1_ref[...], preferred_element_type=jnp.float32)
    h = jnp.maximum(h + b1_ref[...], 0.0)               # bias + ReLU in f32
    h = h.astype(w2_ref.dtype)
    o = jnp.dot(h, w2_ref[...], preferred_element_type=jnp.float32)
    o_ref[...] = (o + b2_ref[...]).astype(o_ref.dtype)


def _device_defaults():
    """(default block_batch, vmem_limit_bytes or None, tensorcores per chip)."""
    try:
        kind = jax.devices()[0].device_kind.lower()
    except Exception:  # pragma: no cover - defensive
        kind = ""
    if "v7" in kind:
        # 2 TCs/chip, 64 MiB VMEM/TC, ~3.2 TB/s HBM: bigger tiles + megacore split.
        return 2048, 48 << 20, 2
    if "v6" in kind:
        return 2048, 40 << 20, 1
    if "v5" in kind:
        # 16 MiB default scoped VMEM: tb=1024 f32 (~8 MiB double-buffered) fits.
        return 1024, None, 1
    return 1024, None, 1


def prepare_params(w1, b1, w2, b2, *, compute_dtype=jnp.float32):
    """Zero-pad hidden/class dims to 128 lanes ONCE; reuse across forward calls.

    w1: (784, 50), b1: (50,), w2: (50, 10), b2: (10,) — weights pre-transposed
    relative to PyTorch's (out, in) storage."""
    cdt = jnp.dtype(compute_dtype)
    w1p = jnp.zeros((INPUT_SIZE, LANE_PAD), cdt).at[:, :HIDDEN].set(w1.astype(cdt))
    w2p = jnp.zeros((LANE_PAD, LANE_PAD), cdt).at[:HIDDEN, :NUM_CLASSES].set(w2.astype(cdt))
    b1p = jnp.zeros((1, LANE_PAD), jnp.float32).at[:, :HIDDEN].set(b1.astype(jnp.float32))
    b2p = jnp.zeros((1, LANE_PAD), jnp.float32).at[:, :NUM_CLASSES].set(b2.astype(jnp.float32))
    return w1p, b1p, w2p, b2p


def fcnn_forward(x, padded_params, *, block_batch=None, out_dtype=None,
                 slice_logits=True):
    """relu(x @ w1 + b1) @ w2 + b2 as one batch-tiled Pallas kernel.

    `padded_params` comes from prepare_params(). With slice_logits=False the
    padded (B, 128) buffer is returned (columns [10:] are zero) so the consumer
    can fuse the slice instead of paying an extra HBM pass here."""
    w1p, b1p, w2p, b2p = padded_params
    B = x.shape[0]
    out_dtype = jnp.dtype(out_dtype) if out_dtype is not None else x.dtype

    default_bb, vmem_limit, n_cores = _device_defaults()
    bb = block_batch if block_batch is not None else default_bb

    bf16_involved = any(jnp.dtype(d) == jnp.bfloat16
                        for d in (x.dtype, w1p.dtype, out_dtype))
    align = 16 if bf16_involved else 8  # bf16 packs 16 rows per sublane vreg

    # Batch tile selection.
    tb = min(bb, B)
    if n_cores >= 2 and tb >= B and B >= 2 * align:
        # v7x megacore: make sure the grid has >= 2 steps so both TCs engage.
        half = -(-B // 2)
        tb = -(-half // align) * align
    if tb < B:
        tb = max(align, (tb // align) * align)  # sub-full tiles must be aligned
    grid = (pl.cdiv(B, tb),)

    flops = 2 * B * (INPUT_SIZE * LANE_PAD + LANE_PAD * LANE_PAD)
    bytes_accessed = (
        B * INPUT_SIZE * x.dtype.itemsize            # x read (no wrapper cast)
        + B * LANE_PAD * out_dtype.itemsize          # padded lane-dense store
        + w1p.size * w1p.dtype.itemsize
        + w2p.size * w2p.dtype.itemsize
        + b1p.size * 4 + b2p.size * 4
    )

    out = pl.pallas_call(
        _fcnn_kernel,
        out_shape=jax.ShapeDtypeStruct((B, LANE_PAD), out_dtype),
        grid_spec=pl.GridSpec(
            grid=grid,
            in_specs=[
                pl.BlockSpec((tb, INPUT_SIZE), lambda i: (i, 0)),        # x: batch-tiled
                pl.BlockSpec((INPUT_SIZE, LANE_PAD), lambda i: (0, 0)),  # W1: resident
                pl.BlockSpec((1, LANE_PAD), lambda i: (0, 0)),           # b1: resident
                pl.BlockSpec((LANE_PAD, LANE_PAD), lambda i: (0, 0)),    # W2: resident
                pl.BlockSpec((1, LANE_PAD), lambda i: (0, 0)),           # b2: resident
            ],
            out_specs=pl.BlockSpec((tb, LANE_PAD), lambda i: (i, 0)),    # lane-dense store
        ),
        compiler_params=pltpu.CompilerParams(
            dimension_semantics=("parallel",),   # megacore-shardable batch axis
            vmem_limit_bytes=vmem_limit,
        ),
        cost_estimate=pl.CostEstimate(
            flops=flops, transcendentals=0, bytes_accessed=bytes_accessed),
    )(x, w1p, b1p, w2p, b2p)

    if slice_logits:
        # Extra HBM pass; consumers on the hot path should use slice_logits=False.
        return out[:, :NUM_CLASSES]
    return out


def init_params(key):
    """Deterministic parameter init matching nn.Linear shapes (stored as (in, out))."""
    k1, k2, k3, k4 = jax.random.split(key, 4)
    bound1 = 1.0 / (INPUT_SIZE ** 0.5)
    bound2 = 1.0 / (HIDDEN ** 0.5)
    w1 = jax.random.uniform(k1, (INPUT_SIZE, HIDDEN), jnp.float32, -bound1, bound1)
    b1 = jax.random.uniform(k2, (HIDDEN,), jnp.float32, -bound1, bound1)
    w2 = jax.random.uniform(k3, (HIDDEN, NUM_CLASSES), jnp.float32, -bound2, bound2)
    b2 = jax.random.uniform(k4, (NUM_CLASSES,), jnp.float32, -bound2, bound2)
    return w1, b1, w2, b2


if __name__ == "__main__":
    key = jax.random.PRNGKey(0)
    k_x, k_p = jax.random.split(key)

    w1, b1, w2, b2 = init_params(k_p)
    # Padding done ONCE and reused across calls (perf review item 1).
    params = prepare_params(w1, b1, w2, b2)  # f32 compute keeps exact parity
    for p in params:
        p.block_until_ready()

    def ref_forward(xx):
        return jnp.maximum(xx @ w1 + b1, 0.0) @ w2 + b2

    # 1) Spec-sized run: batch 64 (matches torch.randn(64, 784)).
    batch = 64
    x = jax.random.normal(k_x, (batch, INPUT_SIZE), dtype=jnp.float32)
    out = jax.block_until_ready(fcnn_forward(x, params))
    assert out.shape == (batch, NUM_CLASSES)
    assert jnp.allclose(out, ref_forward(x), atol=1e-4, rtol=1e-4)

    # 2) Multi-tile run: exercise the batch-tiled pipelined grid path (grid > 1).
    batch2 = 256
    x2 = jax.random.normal(jax.random.PRNGKey(1), (batch2, INPUT_SIZE), dtype=jnp.float32)
    out2 = jax.block_until_ready(fcnn_forward(x2, params, block_batch=64))
    assert out2.shape == (batch2, NUM_CLASSES)
    assert jnp.allclose(out2, ref_forward(x2), atol=1e-4, rtol=1e-4)

    # 3) Padded-output fast path (no external slice): columns [10:] are zero.
    out3 = jax.block_until_ready(fcnn_forward(x, params, slice_logits=False))
    assert out3.shape == (batch, LANE_PAD)
    assert jnp.allclose(out3[:, :NUM_CLASSES], ref_forward(x), atol=1e-4, rtol=1e-4)
    assert jnp.all(out3[:, NUM_CLASSES:] == 0.0)

    print("KERNEL_OK")
</pallas_src>

<mosaic_0001>
module attributes {stable_mosaic.version = 11 : i64} {
  func.func @_fcnn_kernel(%arg0: i32, %arg1: memref<64x784xf32, #tpu.memory_space<vmem>>, %arg2: memref<784x128xf32, #tpu.memory_space<vmem>>, %arg3: memref<1x128xf32, #tpu.memory_space<vmem>>, %arg4: memref<128x128xf32, #tpu.memory_space<vmem>>, %arg5: memref<1x128xf32, #tpu.memory_space<vmem>>, %arg6: memref<64x128xf32, #tpu.memory_space<vmem>>) attributes {dimension_semantics = [#tpu.dimension_semantics<parallel>], iteration_bounds = array<i64: 1>, scalar_prefetch = 0 : i64, scratch_operands = 0 : i64, tpu.core_type = #tpu.core_type<tc>, window_params = [{transform_indices = @transform_0, window_bounds = array<i64: 64, 784>}, {pipeline_mode = #tpu.pipeline_mode<synchronous>, transform_indices = @transform_1, window_bounds = array<i64: 784, 128>}, {pipeline_mode = #tpu.pipeline_mode<synchronous>, transform_indices = @transform_2, window_bounds = array<i64: 1, 128>}, {pipeline_mode = #tpu.pipeline_mode<synchronous>, transform_indices = @transform_3, window_bounds = array<i64: 128, 128>}, {pipeline_mode = #tpu.pipeline_mode<synchronous>, transform_indices = @transform_4, window_bounds = array<i64: 1, 128>}, {transform_indices = @transform_5, window_bounds = array<i64: 64, 128>}]} {
    %c0 = arith.constant 0 : index
    %c0_0 = arith.constant 0 : index
    %0 = vector.load %arg1[%c0, %c0_0] : memref<64x784xf32, #tpu.memory_space<vmem>>, vector<64x784xf32>
    %c0_1 = arith.constant 0 : index
    %c0_2 = arith.constant 0 : index
    %1 = vector.load %arg2[%c0_1, %c0_2] : memref<784x128xf32, #tpu.memory_space<vmem>>, vector<784x128xf32>
    %cst = arith.constant dense<0.000000e+00> : vector<64x128xf32>
    %2 = tpu.matmul %0, %1, %cst {dimension_numbers = #tpu.dot_dimension_numbers<[1], [0], [0], [1], [0, 0, 1, 1], [], []>} : vector<64x784xf32>, vector<784x128xf32>, vector<64x128xf32> -> vector<64x128xf32>
    %c0_3 = arith.constant 0 : index
    %c0_4 = arith.constant 0 : index
    %3 = vector.load %arg3[%c0_3, %c0_4] : memref<1x128xf32, #tpu.memory_space<vmem>>, vector<1x128xf32>
    %4 = vector.broadcast %3 : vector<1x128xf32> to vector<64x128xf32>
    %5 = arith.addf %2, %4 : vector<64x128xf32>
    %cst_5 = arith.constant 0.000000e+00 : f32
    %6 = vector.broadcast %cst_5 : f32 to vector<64x128xf32>
    %7 = arith.maximumf %5, %6 : vector<64x128xf32>
    %c0_6 = arith.constant 0 : index
    %c0_7 = arith.constant 0 : index
    %8 = vector.load %arg4[%c0_6, %c0_7] : memref<128x128xf32, #tpu.memory_space<vmem>>, vector<128x128xf32>
    %cst_8 = arith.constant dense<0.000000e+00> : vector<64x128xf32>
    %9 = tpu.matmul %7, %8, %cst_8 {dimension_numbers = #tpu.dot_dimension_numbers<[1], [0], [0], [1], [0, 0, 1, 1], [], []>} : vector<64x128xf32>, vector<128x128xf32>, vector<64x128xf32> -> vector<64x128xf32>
    %c0_9 = arith.constant 0 : index
    %c0_10 = arith.constant 0 : index
    %10 = vector.load %arg5[%c0_9, %c0_10] : memref<1x128xf32, #tpu.memory_space<vmem>>, vector<1x128xf32>
    %11 = vector.broadcast %10 : vector<1x128xf32> to vector<64x128xf32>
    %12 = arith.addf %9, %11 : vector<64x128xf32>
    %c0_11 = arith.constant 0 : index
    %c0_12 = arith.constant 0 : index
    %13 = vector.load %arg6[%c0_11, %c0_12] : memref<64x128xf32, #tpu.memory_space<vmem>>, vector<64x128xf32>
    tpu.vector_store %arg6[%c0_11, %c0_12], %12 {strides = array<i32>} : memref<64x128xf32, #tpu.memory_space<vmem>>, vector<64x128xf32>,
    return
  }
  func.func @transform_0(%arg0: i32) -> (i32, i32) {
    %c0_i32 = arith.constant 0 : i32
    %c0_i32_0 = arith.constant 0 : i32
    return %arg0, %c0_i32 : i32, i32
  }
  func.func @transform_1(%arg0: i32) -> (i32, i32) {
    %c0_i32 = arith.constant 0 : i32
    %c0_i32_0 = arith.constant 0 : i32
    %c0_i32_1 = arith.constant 0 : i32
    return %c0_i32, %c0_i32_0 : i32, i32
  }
  func.func @transform_2(%arg0: i32) -> (i32, i32) {
    %c0_i32 = arith.constant 0 : i32
    %c0_i32_0 = arith.constant 0 : i32
    %c0_i32_1 = arith.constant 0 : i32
    return %c0_i32, %c0_i32_0 : i32, i32
  }
  func.func @transform_3(%arg0: i32) -> (i32, i32) {
    %c0_i32 = arith.constant 0 : i32
    %c0_i32_0 = arith.constant 0 : i32
    %c0_i32_1 = arith.constant 0 : i32
    return %c0_i32, %c0_i32_0 : i32, i32
  }
  func.func @transform_4(%arg0: i32) -> (i32, i32) {
    %c0_i32 = arith.constant 0 : i32
    %c0_i32_0 = arith.constant 0 : i32
    %c0_i32_1 = arith.constant 0 : i32
    return %c0_i32, %c0_i32_0 : i32, i32
  }
  func.func @transform_5(%arg0: i32) -> (i32, i32) {
    %c0_i32 = arith.constant 0 : i32
    %c0_i32_0 = arith.constant 0 : i32
    return %arg0, %c0_i32 : i32, i32
  }
}

</mosaic_0001>

<bundles_post_ra>
// kernel: tpu_custom_call.1
= control target key start
LH: loop header
LB: loop body
LE: loop exit
PB: predicated region body
PF: predicated region fallthrough
CT: control target
= control target key end

     0   :  { %10 = vsyncpa [#allocation3], 0  ;;  %s1461_s0 = inlined_call_operand.hbm [shape: f32[64,784], index: 0, kind: input, shape index: {}]   ;;  %s1462_s1 = inlined_call_operand.hbm [shape: f32[784,128], index: 1, kind: input, shape index: {}]   ;;  %s1463_s2 = inlined_call_operand.vmem [shape: f32[1,128], index: 2, kind: input, shape index: {}]   ;;  %s1464_s3 = inlined_call_operand.hbm [shape: f32[128,128], index: 3, kind: input, shape index: {}]   ;;  %s1465_s4 = inlined_call_operand.vmem [shape: f32[1,128], index: 4, kind: input, shape index: {}]   ;;  %s1466_s5 = inlined_call_operand.hbm [shape: f32[64,128], index: 5, kind: output, shape index: {}]  }
   0x1   :  { %11 = vsyncpa [#allocation6], 0 }
   0x2   :  { %12 = vsyncpa [#allocation4], 0  ;;  %s1352_s18 = smov [#allocation5]   ;;  %s1258_s22 = scalar_lea.hbm %s1462_s1, 12544 }
   0x3   :  { %s30_s19 = sshll.u32 %s1352_s18, 4  ;;  %p1259_p0 = scmp.ne.s32.totalorder %s1462_s1, %s1258_s22  ;;  %s31_s19 = int_to_ptr.vmem [resolvable:$true] %s30_s19 }
   0x4   :  { %p1262_p1 = scmp.lt.u32.totalorder %s1258_s22, %s1462_s1 }
   0x6   :  { %p1264_p2 = pnand %p1262_p1, %p1259_p0 }
   0x8   :  { %1267 = shalt.err (!%p1264_p2)
}
   0x9   :  { %s1268_s27 = scalar_lea.vmem %s31_s19, 12544  ;;  %p1273_p4 = scmp.lt.s32.totalorder %s31_s19, %s31_s19 }
   0xa   :  { %p1269_p3 = scmp.ne.s32.totalorder %s31_s19, %s1268_s27  ;;  %p1274_p5 = scmp.lt.s32.totalorder %s1268_s27, %s1268_s27 }
   0xc   :  { %p1275_p6 = por %p1274_p5, %p1273_p4 }
   0xe   :  { %p1276_p7 = pnand %p1275_p6, %p1269_p3 }
  0x10   :  { %1279 = shalt.err (!%p1276_p7)
}
  0x11   :  { %s1353_s28 = smov 128   ;;  %s1354_s29 = smov 8  }
  0x12   :  { %36 = dma.hbm_to_vmem [thread:$0]  %s1462_s1, 12544, %s31_s19, [#allocation6], %s1353_s28, %s1353_s28, %s1354_s29  }
  0x13   :  { %s1355_s7 = smov [#allocation2]   ;;  %s1280_s11 = scalar_lea.hbm %s1461_s0, 7168 }
  0x14   :  { %s18_s8 = sshll.u32 %s1355_s7, 4  ;;  %p1281_p8 = scmp.ne.s32.totalorder %s1461_s0, %s1280_s11  ;;  %s19_s8 = int_to_ptr.vmem [resolvable:$true] %s18_s8 }
  0x15   :  { %p1284_p9 = scmp.lt.u32.totalorder %s1280_s11, %s1461_s0 }
  0x17   :  { %p1286_p10 = pnand %p1284_p9, %p1281_p8 }
  0x19   :  { %1289 = shalt.err (!%p1286_p10)
}
  0x1a   :  { %s1290_s16 = scalar_lea.vmem %s19_s8, 7168  ;;  %p1295_p12 = scmp.lt.s32.totalorder %s19_s8, %s19_s8 }
  0x1b   :  { %p1291_p11 = scmp.ne.s32.totalorder %s19_s8, %s1290_s16  ;;  %p1296_p13 = scmp.lt.s32.totalorder %s1290_s16, %s1290_s16 }
  0x1d   :  { %p1297_p0 = por %p1296_p13, %p1295_p12 }
  0x1f   :  { %p1298_p1 = pnand %p1297_p0, %p1291_p11 }
  0x21   :  { %1301 = shalt.err (!%p1298_p1)
}
  0x22   :  { %s1356_s1 = smov 896   ;;  %s1357_s17 = smov 56  }
  0x23   :  { %24 = dma.hbm_to_vmem [thread:$0]  %s1461_s0, 7168, %s19_s8, [#allocation3], %s1356_s1, %s1356_s1, %s1357_s17  }
  0x24   :  { %s1358_s20 = smov [#allocation7]   ;;  %s1302_s24 = scalar_lea.hbm %s1464_s3, 2048 }
  0x25   :  { %s44_s21 = sshll.u32 %s1358_s20, 4  ;;  %p1303_p2 = scmp.ne.s32.totalorder %s1464_s3, %s1302_s24  ;;  %s45_s21 = int_to_ptr.vmem [resolvable:$true] %s44_s21 }
  0x26   :  { %p1306_p3 = scmp.lt.u32.totalorder %s1302_s24, %s1464_s3 }
  0x28   :  { %p1308_p4 = pnand %p1306_p3, %p1303_p2 }
  0x2a   :  { %1311 = shalt.err (!%p1308_p4)
}
  0x2b   :  { %s1312_s6 = scalar_lea.vmem %s45_s21, 2048  ;;  %p1317_p6 = scmp.lt.s32.totalorder %s45_s21, %s45_s21 }
  0x2c   :  { %p1313_p5 = scmp.ne.s32.totalorder %s45_s21, %s1312_s6  ;;  %p1318_p7 = scmp.lt.s32.totalorder %s1312_s6, %s1312_s6 }
  0x2e   :  { %p1319_p8 = por %p1318_p7, %p1317_p6 }
  0x30   :  { %p1320_p9 = pnand %p1319_p8, %p1313_p5 }
  0x32   :  { %1323 = shalt.err (!%p1320_p9)
}
  0x33   :  { %50 = dma.hbm_to_vmem [thread:$0]  %s1464_s3, 2048, %s45_s21, [#allocation6], %s1353_s28, %s1353_s28, %s1354_s29  }
  0x34   :  { %1346 = dma.done.wait [#allocation3], 7168  }
  0x35   :  { %1347 = vsyncadd [#allocation3], 4294960128 }
  0x36   :  { %1348 = dma.done.wait [#allocation6], 14592  }
  0x37   :  { %1349 = vsyncadd [#allocation6], 4294952704  ;;  %v134_v0 = vld [vmem:[#allocation5 + $0x80] sm:$0xff]  ;;  %v135_v1 = vld [vmem:[#allocation5 + $0x88] sm:$0xff]  ;;  %vm223_vm0 = vcmask 130048   ;;  %s1359_s10 = smov [#allocation8]  }
  0x38   :  { %v118_v2 = vld [vmem:[#allocation5] sm:$0xff]  ;;  %v1102_v3 = vpack.c.bf16 %v135_v1, %v134_v0  ;;  %v119_v4 = vld [vmem:[#allocation5 + $0x8] sm:$0xff]  ;;  %v136_v11 = vld [vmem:[#allocation5 + $0x90] sm:$0xff] }
  0x39   :  { %v166_v5 = vld [vmem:[#allocation5 + $0x180] sm:$0xff]  ;;  %v167_v6 = vld [vmem:[#allocation5 + $0x188] sm:$0xff]  ;;  %v1104_v7 = vpack.c.bf16 %v119_v4, %v118_v2  ;;  %v137_v13 = vld [vmem:[#allocation5 + $0x98] sm:$0xff] }
  0x3a   :  { %v1134_v8 = vpack.c.bf16 %v167_v6, %v166_v5  ;;  %v150_v9 = vld [vmem:[#allocation5 + $0x100] sm:$0xff]  ;;  %v151_v10 = vld [vmem:[#allocation5 + $0x108] sm:$0xff]  ;;  %1103 = vmatprep.subr.bf16.mxu0 %v1102_v3  ;;  %v120_v14 = vld [vmem:[#allocation5 + $0x10] sm:$0xff]  ;;  %v1106_v16 = vpack.c.bf16 %v137_v13, %v136_v11 }
  0x3b   :  { %v1136_v12 = vpack.c.bf16 %v151_v10, %v150_v9  ;;  %v121_v15 = vld [vmem:[#allocation5 + $0x18] sm:$0xff]  ;;  %1105 = vmatpush3.bf16.msra.mxu0 %v1104_v7  ;;  %v168_v18 = vld [vmem:[#allocation5 + $0x190] sm:$0xff]  ;;  %v138_v23 = vld [vmem:[#allocation5 + $0xa0] sm:$0xff] }
  0x3c   :  { %1135 = vmatprep.subr.bf16.mxu1 %v1134_v8  ;;  %v1108_v17 = vpack.c.bf16 %v121_v15, %v120_v14  ;;  %v169_v19 = vld [vmem:[#allocation5 + $0x198] sm:$0xff]  ;;  %v152_v20 = vld [vmem:[#allocation5 + $0x110] sm:$0xff]  ;;  %v139_v24 = vld [vmem:[#allocation5 + $0xa8] sm:$0xff]  ;;  %1107 = vmatprep.subr.bf16.mxu0 %v1106_v16 }
  0x3d   :  { %1137 = vmatpush3.bf16.msra.mxu1 %v1136_v12  ;;  %v1138_v21 = vpack.c.bf16 %v169_v19, %v168_v18  ;;  %v153_v22 = vld [vmem:[#allocation5 + $0x118] sm:$0xff]  ;;  %v1110_v26 = vpack.c.bf16 %v139_v24, %v138_v23  ;;  %v122_v27 = vld [vmem:[#allocation5 + $0x20] sm:$0xff]  ;;  %v123_v28 = vld [vmem:[#allocation5 + $0x28] sm:$0xff] }
  0x3e   :  { %v1140_v25 = vpack.c.bf16 %v153_v22, %v152_v20  ;;  %v170_v29 = vld [vmem:[#allocation5 + $0x1a0] sm:$0xff]  ;;  %v171_v30 = vld [vmem:[#allocation5 + $0x1a8] sm:$0xff]  ;;  %v1112_v33 = vpack.c.bf16 %v123_v28, %v122_v27  ;;  %v140_v35 = vld [vmem:[#allocation5 + $0xb0] sm:$0xff] }
  0x3f   :  { %1139 = vmatprep.subr.bf16.mxu1 %v1138_v21  ;;  %v154_v31 = vld [vmem:[#allocation5 + $0x120] sm:$0xff]  ;;  %v155_v32 = vld [vmem:[#allocation5 + $0x128] sm:$0xff]  ;;  %1109 = vmatpush3.bf16.msra.mxu0 %v1108_v17  ;;  %v1142_v34 = vpack.c.bf16 %v171_v30, %v170_v29  ;;  %v141_v36 = vld [vmem:[#allocation5 + $0xb8] sm:$0xff] }
  0x40   :  { %v124_v37 = vld [vmem:[#allocation5 + $0x30] sm:$0xff]  ;;  %1111 = vmatprep.subr.bf16.mxu0 %v1110_v26  ;;  %v1144_v38 = vpack.c.bf16 %v155_v32, %v154_v31  ;;  %v1114_v39 = vpack.c.bf16 %v141_v36, %v140_v35  ;;  %v125_v40 = vld [vmem:[#allocation5 + $0x38] sm:$0xff]  ;;  %v142_v46 = vld [vmem:[#allocation5 + $0xc0] sm:$0xff] }
  0x41   :  { %1141 = vmatpush3.bf16.msra.mxu1 %v1140_v25  ;;  %v172_v41 = vld [vmem:[#allocation5 + $0x1b0] sm:$0xff]  ;;  %v173_v42 = vld [vmem:[#allocation5 + $0x1b8] sm:$0xff]  ;;  %v143_v47 = vld [vmem:[#allocation5 + $0xc8] sm:$0xff]  ;;  %v1116_v48 = vpack.c.bf16 %v125_v40, %v124_v37 }
  0x42   :  { %1143 = vmatprep.subr.bf16.mxu1 %v1142_v34  ;;  %v1146_v43 = vpack.c.bf16 %v173_v42, %v172_v41  ;;  %v156_v44 = vld [vmem:[#allocation5 + $0x130] sm:$0xff]  ;;  %v157_v45 = vld [vmem:[#allocation5 + $0x138] sm:$0xff]  ;;  %v174_v49 = vld [vmem:[#allocation5 + $0x1c0] sm:$0xff]  ;;  %v1118_v52 = vpack.c.bf16 %v143_v47, %v142_v46 }
  0x43   :  { %1113 = vmatpush3.bf16.msra.mxu0 %v1112_v33  ;;  %v175_v50 = vld [vmem:[#allocation5 + $0x1c8] sm:$0xff]  ;;  %v1148_v51 = vpack.c.bf16 %v157_v45, %v156_v44  ;;  %v126_v53 = vld [vmem:[#allocation5 + $0x40] sm:$0xff]  ;;  %v144_v58 = vld [vmem:[#allocation5 + $0xd0] sm:$0xff] }
  0x44   :  { %1115 = vmatprep.subr.bf16.mxu0 %v1114_v39  ;;  %v127_v54 = vld [vmem:[#allocation5 + $0x48] sm:$0xff]  ;;  %v158_v55 = vld [vmem:[#allocation5 + $0x140] sm:$0xff]  ;;  %v1150_v56 = vpack.c.bf16 %v175_v50, %v174_v49  ;;  %v145_v59 = vld [vmem:[#allocation5 + $0xd8] sm:$0xff] }
  0x45   :  { %1145 = vmatpush3.bf16.msra.mxu1 %v1144_v38  ;;  %v159_v57 = vld [vmem:[#allocation5 + $0x148] sm:$0xff]  ;;  %v176_v60 = vld [vmem:[#allocation5 + $0x1d0] sm:$0xff]  ;;  %v177_v61 = vld [vmem:[#allocation5 + $0x1d8] sm:$0xff]  ;;  %v1120_v62 = vpack.c.bf16 %v127_v54, %v126_v53  ;;  %v1122_v0 = vpack.c.bf16 %v145_v59, %v144_v58 }
  0x46   :  { %1147 = vmatprep.subr.bf16.mxu1 %v1146_v43  ;;  %v1152_v63 = vpack.c.bf16 %v159_v57, %v158_v55  ;;  %v128_v1 = vld [vmem:[#allocation5 + $0x50] sm:$0xff]  ;;  %v129_v2 = vld [vmem:[#allocation5 + $0x58] sm:$0xff]  ;;  %v1154_v4 = vpack.c.bf16 %v177_v61, %v176_v60  ;;  %v146_v6 = vld [vmem:[#allocation5 + $0xe0] sm:$0xff] }
  0x47   :  { %1117 = vmatpush3.bf16.msra.mxu0 %v1116_v48  ;;  %v160_v3 = vld [vmem:[#allocation5 + $0x150] sm:$0xff]  ;;  %v161_v5 = vld [vmem:[#allocation5 + $0x158] sm:$0xff]  ;;  %v147_v7 = vld [vmem:[#allocation5 + $0xe8] sm:$0xff]  ;;  %v1124_v10 = vpack.c.bf16 %v129_v2, %v128_v1 }
  0x48   :  { %1119 = vmatprep.subr.bf16.mxu0 %v1118_v52  ;;  %v178_v8 = vld [vmem:[#allocation5 + $0x1e0] sm:$0xff]  ;;  %v179_v9 = vld [vmem:[#allocation5 + $0x1e8] sm:$0xff]  ;;  %v1156_v13 = vpack.c.bf16 %v161_v5, %v160_v3  ;;  %v1126_v14 = vpack.c.bf16 %v147_v7, %v146_v6  ;;  %v148_v19 = vld [vmem:[#allocation5 + $0xf0] sm:$0xff] }
  0x49   :  { %1149 = vmatpush3.bf16.msra.mxu1 %v1148_v51  ;;  %v130_v11 = vld [vmem:[#allocation5 + $0x60] sm:$0xff]  ;;  %v63_v12 = vld [vmem:[#allocation2 + $0x8] sm:$0xff]  ;;  %v1158_v18 = vpack.c.bf16 %v179_v9, %v178_v8  ;;  %v149_v20 = vld [vmem:[#allocation5 + $0xf8] sm:$0xff] }
  0x4a   :  { %1151 = vmatprep.subr.bf16.mxu1 %v1150_v56  ;;  %v131_v15 = vld [vmem:[#allocation5 + $0x68] sm:$0xff]  ;;  %v162_v16 = vld [vmem:[#allocation5 + $0x160] sm:$0xff]  ;;  %312 = vmatprep.mubr.f32.mxu0 %v63_v12  ;;  %v65_v21 = vld [vmem:[#allocation2 + $0x18] sm:$0xff]  ;;  %v1130_v26 = vpack.c.bf16 %v149_v20, %v148_v19 }
  0x4b   :  { %1121 = vmatpush3.bf16.msra.mxu0 %v1120_v62  ;;  %v163_v17 = vld [vmem:[#allocation5 + $0x168] sm:$0xff]  ;;  %v180_v22 = vld [vmem:[#allocation5 + $0x1f0] sm:$0xff]  ;;  %v181_v23 = vld [vmem:[#allocation5 + $0x1f8] sm:$0xff]  ;;  %417 = vmatprep.mubr.f32.mxu1 %v65_v21  ;;  %v1128_v24 = vpack.c.bf16 %v131_v15, %v130_v11 }
  0x4c   :  { %1123 = vmatprep.subr.bf16.mxu0 %v1122_v0  ;;  %v1160_v25 = vpack.c.bf16 %v163_v17, %v162_v16  ;;  %v132_v27 = vld [vmem:[#allocation5 + $0x70] sm:$0xff]  ;;  %v133_v28 = vld [vmem:[#allocation5 + $0x78] sm:$0xff]  ;;  %v1162_v30 = vpack.c.bf16 %v181_v23, %v180_v22  ;;  %v198_v32 = vld [vmem:[#allocation5 + $0x280] sm:$0xff] }
  0x4d   :  { %1153 = vmatpush3.bf16.msra.mxu1 %v1152_v63  ;;  %v164_v29 = vld [vmem:[#allocation5 + $0x170] sm:$0xff]  ;;  %v165_v31 = vld [vmem:[#allocation5 + $0x178] sm:$0xff]  ;;  %v199_v33 = vld [vmem:[#allocation5 + $0x288] sm:$0xff]  ;;  %v1132_v34 = vpack.c.bf16 %v133_v28, %v132_v27 }
  0x4e   :  { %1155 = vmatprep.subr.bf16.mxu1 %v1154_v4  ;;  %v1164_v35 = vpack.c.bf16 %v165_v31, %v164_v29  ;;  %v1166_v36 = vpack.c.bf16 %v199_v33, %v198_v32  ;;  %v182_v37 = vld [vmem:[#allocation5 + $0x200] sm:$0xff]  ;;  %v183_v38 = vld [vmem:[#allocation5 + $0x208] sm:$0xff]  ;;  %v200_v39 = vld [vmem:[#allocation5 + $0x290] sm:$0xff] }
  0x4f   :  { %1125 = vmatpush3.bf16.msra.mxu0 %v1124_v10  ;;  %v201_v40 = vld [vmem:[#allocation5 + $0x298] sm:$0xff]  ;;  %v62_v41 = vld [vmem:[#allocation2] sm:$0xff]  ;;  %v1168_v42 = vpack.c.bf16 %v183_v38, %v182_v37  ;;  %v64_v43 = vld [vmem:[#allocation2 + $0x10] sm:$0xff] }
  0x50   :  { %1127 = vmatprep.subr.bf16.mxu0 %v1126_v14  ;;  %v1170_v44 = vpack.c.bf16 %v201_v40, %v200_v39  ;;  %v184_v45 = vld [vmem:[#allocation5 + $0x210] sm:$0xff]  ;;  %v185_v46 = vld [vmem:[#allocation5 + $0x218] sm:$0xff]  ;;  %v70_v47 = vld [vmem:[#allocation2 + $0x40] sm:$0xff] }
  0x51   :  { %1157 = vmatpush3.bf16.msra.mxu1 %v1156_v13  ;;  %v202_v48 = vld [vmem:[#allocation5 + $0x2a0] sm:$0xff]  ;;  %v203_v49 = vld [vmem:[#allocation5 + $0x2a8] sm:$0xff]  ;;  %v72_v50 = vld [vmem:[#allocation2 + $0x50] sm:$0xff]  ;;  %v1172_v54 = vpack.c.bf16 %v185_v46, %v184_v45 }
  0x52   :  { %1159 = vmatprep.subr.bf16.mxu1 %v1158_v18  ;;  %v214_v51 = vld [vmem:[#allocation5 + $0x300] sm:$0xff]  ;;  %v215_v52 = vld [vmem:[#allocation5 + $0x308] sm:$0xff]  ;;  %v69_v53 = vld [vmem:[#allocation2 + $0x38] sm:$0xff]  ;;  %v1174_v57 = vpack.c.bf16 %v203_v49, %v202_v48 }
  0x53   :  { %1129 = vmatpush3.bf16.msra.mxu0 %v1128_v24  ;;  %v1198_v55 = vpack.c.bf16 %v215_v52, %v214_v51  ;;  %v71_v56 = vld [vmem:[#allocation2 + $0x48] sm:$0xff]  ;;  %v186_v58 = vld [vmem:[#allocation5 + $0x220] sm:$0xff]  ;;  %v77_v60 = vld [vmem:[#allocation2 + $0x78] sm:$0xff] }
  0x54   :  { %1131 = vmatprep.subr.bf16.mxu0 %v1130_v26  ;;  %v187_v59 = vld [vmem:[#allocation5 + $0x228] sm:$0xff]  ;;  %v204_v61 = vld [vmem:[#allocation5 + $0x2b0] sm:$0xff]  ;;  %v205_v62 = vld [vmem:[#allocation5 + $0x2b8] sm:$0xff] }
  0x55   :  { %1161 = vmatpush3.bf16.msra.mxu1 %v1160_v25  ;;  %v79_v63 = vld [vmem:[#allocation2 + $0x88] sm:$0xff]  ;;  %v76_v0 = vld [vmem:[#allocation2 + $0x70] sm:$0xff]  ;;  %v1176_v1 = vpack.c.bf16 %v187_v59, %v186_v58  ;;  %v78_v2 = vld [vmem:[#allocation2 + $0x80] sm:$0xff]  ;;  %v1178_v3 = vpack.c.bf16 %v205_v62, %v204_v61 }
  0x56   :  { %1163 = vmatprep.subr.bf16.mxu1 %v1162_v30  ;;  %v188_v4 = vld [vmem:[#allocation5 + $0x230] sm:$0xff]  ;;  %v189_v5 = vld [vmem:[#allocation5 + $0x238] sm:$0xff]  ;;  %v206_v7 = vld [vmem:[#allocation5 + $0x2c0] sm:$0xff] }
  0x57   :  { %1133 = vmatpush3.bf16.msra.mxu0 %v1132_v34  ;;  %v84_v6 = vld [vmem:[#allocation2 + $0xb0] sm:$0xff]  ;;  %v207_v8 = vld [vmem:[#allocation5 + $0x2c8] sm:$0xff]  ;;  %v86_v9 = vld [vmem:[#allocation2 + $0xc0] sm:$0xff]  ;;  %v1180_v11 = vpack.c.bf16 %v189_v5, %v188_v4 }
  0x58   :  { %1167 = vmatprep.subr.bf16.mxu0 %v1166_v36  ;;  %v83_v10 = vld [vmem:[#allocation2 + $0xa8] sm:$0xff]  ;;  %v85_v12 = vld [vmem:[#allocation2 + $0xb8] sm:$0xff]  ;;  %v1182_v13 = vpack.c.bf16 %v207_v8, %v206_v7  ;;  %v190_v14 = vld [vmem:[#allocation5 + $0x240] sm:$0xff] }
  0x59   :  { %1165 = vmatpush3.bf16.msra.mxu1 %v1164_v35  ;;  %v191_v15 = vld [vmem:[#allocation5 + $0x248] sm:$0xff]  ;;  %v208_v17 = vld [vmem:[#allocation5 + $0x2d0] sm:$0xff]  ;;  %v209_v18 = vld [vmem:[#allocation5 + $0x2d8] sm:$0xff] }
  0x5a   :  { %313 = vmatmul.mubr.f32.vlgmr.msra.gmra.mrb[0].mxu0 %v62_v41  ;;  %1199 = vmatprep.subr.bf16.mxu1 %v1198_v55  ;;  %v91_v16 = vld [vmem:[#allocation2 + $0xe8] sm:$0xff]  ;;  %v93_v19 = vld [vmem:[#allocation2 + $0xf8] sm:$0xff]  ;;  %v90_v20 = vld [vmem:[#allocation2 + $0xe0] sm:$0xff]  ;;  %v1184_v21 = vpack.c.bf16 %v191_v15, %v190_v14  ;;  %v1186_v23 = vpack.c.bf16 %v209_v18, %v208_v17 }
  0x5b   :  { %1169 = vmatpush3.bf16.msra.mxu0 %v1168_v42  ;;  %317 = vmatprep.mubr.f32.mxu0 %v70_v47  ;;  %v92_v22 = vld [vmem:[#allocation2 + $0xf0] sm:$0xff]  ;;  %v193_v25 = vld [vmem:[#allocation5 + $0x258] sm:$0xff]  ;;  %v98_v26 = vld [vmem:[#allocation2 + $0x120] sm:$0xff] }
  0x5c   :  { %418 = vmatmul.mubr.f32.vlgmr.msra.gmra.mrb[0].mxu1 %v64_v43  ;;  %1171 = vmatprep.subr.bf16.mxu0 %v1170_v44  ;;  %v192_v24 = vld [vmem:[#allocation5 + $0x250] sm:$0xff]  ;;  %v210_v27 = vld [vmem:[#allocation5 + $0x2e0] sm:$0xff]  ;;  %v211_v28 = vld [vmem:[#allocation5 + $0x2e8] sm:$0xff] }
  0x5d   :  { %422 = vmatprep.mubr.f32.mxu1 %v72_v50  ;;  %1201 = vmatpush3.bf16.msra.mxu1 %v1198_v55  ;;  %v100_v29 = vld [vmem:[#allocation2 + $0x130] sm:$0xff]  ;;  %v97_v30 = vld [vmem:[#allocation2 + $0x118] sm:$0xff]  ;;  %v1188_v31 = vpack.c.bf16 %v193_v25, %v192_v24  ;;  %v99_v32 = vld [vmem:[#allocation2 + $0x128] sm:$0xff]  ;;  %v1190_v33 = vpack.c.bf16 %v211_v28, %v210_v27 }
  0x5e   :  { %318 = vmatmul.mubr.f32.gmra.mrb[2].mxu0 %v69_v53  ;;  %v194_v34 = vld [vmem:[#allocation5 + $0x260] sm:$0xff]  ;;  %v195_v35 = vld [vmem:[#allocation5 + $0x268] sm:$0xff]  ;;  %v105_v36 = vld [vmem:[#allocation2 + $0x158] sm:$0xff] }
  0x5f   :  { %1173 = vmatpush3.bf16.msra.mxu0 %v1172_v54  ;;  %322 = vmatprep.mubr.f32.mxu0 %v77_v60  ;;  %v212_v37 = vld [vmem:[#allocation5 + $0x2f0] sm:$0xff]  ;;  %v213_v38 = vld [vmem:[#allocation5 + $0x2f8] sm:$0xff]  ;;  %v107_v39 = vld [vmem:[#allocation2 + $0x168] sm:$0xff]  ;;  %v1192_v41 = vpack.c.bf16 %v195_v35, %v194_v34 }
  0x60   :  { %423 = vmatmul.mubr.f32.gmra.mrb[2].mxu1 %v71_v56  ;;  %1175 = vmatprep.subr.bf16.mxu0 %v1174_v57  ;;  %v104_v40 = vld [vmem:[#allocation2 + $0x150] sm:$0xff]  ;;  %v106_v42 = vld [vmem:[#allocation2 + $0x160] sm:$0xff]  ;;  %v1194_v43 = vpack.c.bf16 %v213_v38, %v212_v37  ;;  %v197_v45 = vld [vmem:[#allocation5 + $0x278] sm:$0xff] }
  0x61   :  { %427 = vmatprep.mubr.f32.mxu1 %v79_v63  ;;  %v196_v44 = vld [vmem:[#allocation5 + $0x270] sm:$0xff]  ;;  %v114_v47 = vld [vmem:[#allocation2 + $0x1a0] sm:$0xff]  ;;  %v111_v48 = vld [vmem:[#allocation2 + $0x188] sm:$0xff] }
  0x62   :  { %323 = vmatmul.mubr.f32.gmra.mrb[4].mxu0 %v76_v0  ;;  %v112_v46 = vld [vmem:[#allocation2 + $0x190] sm:$0xff]  ;;  %v1196_v49 = vpack.c.bf16 %v197_v45, %v196_v44  ;;  %v113_v50 = vld [vmem:[#allocation2 + $0x198] sm:$0xff]  ;;  %v67_v51 = vld [vmem:[#allocation2 + $0x28] sm:$0xff] }
  0x63   :  { %1177 = vmatpush3.bf16.msra.mxu0 %v1176_v1  ;;  %327 = vmatprep.mubr.f32.mxu0 %v84_v6  ;;  %v68_v52 = vld [vmem:[#allocation2 + $0x30] sm:$0xff]  ;;  %v66_v53 = vld [vmem:[#allocation2 + $0x20] sm:$0xff]  ;;  %v75_v55 = vld [vmem:[#allocation2 + $0x68] sm:$0xff] }
  0x64   :  { %428 = vmatmul.mubr.f32.gmra.mrb[4].mxu1 %v78_v2  ;;  %1179 = vmatprep.subr.bf16.mxu0 %v1178_v3  ;;  %v74_v54 = vld [vmem:[#allocation2 + $0x60] sm:$0xff]  ;;  %v73_v57 = vld [vmem:[#allocation2 + $0x58] sm:$0xff]  ;;  %v96_v60 = vld [vmem:[#allocation2 + $0x110] sm:$0xff] }
  0x65   :  { %432 = vmatprep.mubr.f32.mxu1 %v86_v9  ;;  %v82_v56 = vld [vmem:[#allocation2 + $0xa0] sm:$0xff]  ;;  %v81_v58 = vld [vmem:[#allocation2 + $0x98] sm:$0xff]  ;;  %v80_v61 = vld [vmem:[#allocation2 + $0x90] sm:$0xff] }
  0x66   :  { %328 = vmatmul.mubr.f32.gmra.mrb[6].mxu0 %v83_v10  ;;  %v89_v59 = vld [vmem:[#allocation2 + $0xd8] sm:$0xff]  ;;  %v88_v62 = vld [vmem:[#allocation2 + $0xd0] sm:$0xff]  ;;  %v103_v63 = vld [vmem:[#allocation2 + $0x148] sm:$0xff] }
  0x67   :  { %1181 = vmatpush3.bf16.msra.mxu0 %v1180_v11  ;;  %332 = vmatprep.mubr.f32.mxu0 %v91_v16  ;;  %v110_v0 = vld [vmem:[#allocation2 + $0x180] sm:$0xff]  ;;  %v87_v1 = vld [vmem:[#allocation2 + $0xc8] sm:$0xff]  ;;  %v117_v3 = vld [vmem:[#allocation2 + $0x1b8] sm:$0xff] }
  0x68   :  { %433 = vmatmul.mubr.f32.gmra.mrb[6].mxu1 %v85_v12  ;;  %1183 = vmatprep.subr.bf16.mxu0 %v1182_v13  ;;  %v95_v2 = vld [vmem:[#allocation2 + $0x108] sm:$0xff]  ;;  %v94_v4 = vld [vmem:[#allocation2 + $0x100] sm:$0xff]  ;;  %v101_v6 = vld [vmem:[#allocation2 + $0x138] sm:$0xff] }
  0x69   :  { %437 = vmatprep.mubr.f32.mxu1 %v93_v19  ;;  %v102_v5 = vld [vmem:[#allocation2 + $0x140] sm:$0xff]  ;;  %v109_v7 = vld [vmem:[#allocation2 + $0x178] sm:$0xff]  ;;  %v108_v8 = vld [vmem:[#allocation2 + $0x170] sm:$0xff] }
  0x6a   :  { %333 = vmatmul.mubr.f32.gmra.mrb[8].mxu0 %v90_v20  ;;  %v116_v9 = vld [vmem:[#allocation2 + $0x1b0] sm:$0xff]  ;;  %v115_v10 = vld [vmem:[#allocation2 + $0x1a8] sm:$0xff]  ;;  %v677_v12 = vld [vmem:[#allocation7 + $0x8] sm:$0xff] }
  0x6b   :  { %1185 = vmatpush3.bf16.msra.mxu0 %v1184_v21  ;;  %337 = vmatprep.mubr.f32.mxu0 %v98_v26  ;;  %v676_v11 = vld [vmem:[#allocation7] sm:$0xff]  ;;  %v678_v14 = vld [vmem:[#allocation7 + $0x10] sm:$0xff]  ;;  %v679_v15 = vld [vmem:[#allocation7 + $0x18] sm:$0xff] }
  0x6c   :  { %438 = vmatmul.mubr.f32.gmra.mrb[8].mxu1 %v92_v22  ;;  %1187 = vmatprep.subr.bf16.mxu0 %v1186_v23  ;;  %v1202_v13 = vpack.c.bf16 %v677_v12, %v676_v11  ;;  %v1206_v16 = vpack.c.bf16 %v679_v15, %v678_v14  ;;  %v680_v17 = vld [vmem:[#allocation7 + $0x20] sm:$0xff]  ;;  %v681_v18 = vld [vmem:[#allocation7 + $0x28] sm:$0xff]  ;;  %v682_v20 = vld [vmem:[#allocation7 + $0x30] sm:$0xff] }
  0x6d   :  { %442 = vmatprep.mubr.f32.mxu1 %v100_v29  ;;  %v1210_v19 = vpack.c.bf16 %v681_v18, %v680_v17  ;;  %v683_v21 = vld [vmem:[#allocation7 + $0x38] sm:$0xff]  ;;  %v684_v23 = vld [vmem:[#allocation7 + $0x40] sm:$0xff]  ;;  %v685_v24 = vld [vmem:[#allocation7 + $0x48] sm:$0xff] }
  0x6e   :  { %338 = vmatmul.mubr.f32.gmra.mrb[10].mxu0 %v97_v30  ;;  %1234 = vmatprep.subr.bf16.mxu1 %v1202_v13  ;;  %v1214_v22 = vpack.c.bf16 %v683_v21, %v682_v20  ;;  %v1218_v25 = vpack.c.bf16 %v685_v24, %v684_v23  ;;  %v686_v26 = vld [vmem:[#allocation7 + $0x50] sm:$0xff]  ;;  %v687_v27 = vld [vmem:[#allocation7 + $0x58] sm:$0xff]  ;;  %v688_v29 = vld [vmem:[#allocation7 + $0x60] sm:$0xff] }
  0x6f   :  { %1189 = vmatpush3.bf16.msra.mxu0 %v1188_v31  ;;  %342 = vmatprep.mubr.f32.mxu0 %v105_v36  ;;  %v1222_v28 = vpack.c.bf16 %v687_v27, %v686_v26  ;;  %v689_v30 = vld [vmem:[#allocation7 + $0x68] sm:$0xff]  ;;  %v830_v36 = vld [vmem:[%s1463_s2] ss:$0 sm:$0xff] }
  0x70   :  { %443 = vmatmul.mubr.f32.gmra.mrb[10].mxu1 %v99_v32  ;;  %1191 = vmatprep.subr.bf16.mxu0 %v1190_v33  ;;  %v1226_v31 = vpack.c.bf16 %v689_v30, %v688_v29  ;;  %v690_v32 = vld [vmem:[#allocation7 + $0x70] sm:$0xff]  ;;  %v691_v33 = vld [vmem:[#allocation7 + $0x78] sm:$0xff] }
  0x71   :  { %447 = vmatprep.mubr.f32.mxu1 %v107_v39  ;;  %v1230_v34 = vpack.c.bf16 %v691_v33, %v690_v32 }
  0x72   :  { %343 = vmatmul.mubr.f32.gmra.mrb[12].mxu0 %v104_v40 }
  0x73   :  { %1193 = vmatpush3.bf16.msra.mxu0 %v1192_v41  ;;  %347 = vmatprep.mubr.f32.mxu0 %v112_v46 }
  0x74   :  { %448 = vmatmul.mubr.f32.gmra.mrb[12].mxu1 %v106_v42  ;;  %1195 = vmatprep.subr.bf16.mxu0 %v1194_v43 }
  0x75   :  { %452 = vmatprep.mubr.f32.mxu1 %v114_v47 }
  0x76   :  { %348 = vmatmul.mubr.f32.gmra.mrb[14].mxu0 %v111_v48 }
  0x77   :  { %1197 = vmatpush3.bf16.msra.mxu0 %v1196_v49  ;;  %522 = vmatprep.mubr.f32.mxu0 %v67_v51 }
  0x78   :  { %453 = vmatmul.mubr.f32.gmra.mrb[14].mxu1 %v113_v50  ;;  %1203 = vmatprep.subr.bf16.mxu0 %v1202_v13 }
  0x79   :  { %1046 = vmatprep.mubr.msk.f32.mxu1 %vm223_vm0, %v68_v52 }
  0x7a   :  { %523 = vmatmul.mubr.f32.vlgmr.msra.gmra.mrb[16].mxu0 %v66_v53 }
  0x7b   :  { %527 = vmatprep.mubr.f32.mxu0 %v74_v54  ;;  %1205 = vmatpush3.bf16.msra.mxu0 %v1202_v13 }
  0x7c   :  { %1047 = vmatmul.mubr.msk.f32.vlgmr.msra.gmra.mrb[16].mxu1 %vm223_vm0, %v75_v55  ;;  %1207 = vmatprep.subr.bf16.mxu0 %v1206_v16 }
  0x7d   :  { %1049 = vmatprep.mubr.msk.f32.mxu1 %vm223_vm0, %v82_v56  ;;  %1242 = vmatpush3.bf16.msra.mxu1 %v1202_v13 }
  0x7e   :  { %528 = vmatmul.mubr.f32.gmra.mrb[18].mxu0 %v73_v57  ;;  %1235 = vmatprep.subr.bf16.mxu1 %v1206_v16 }
  0x7f   :  { %532 = vmatprep.mubr.f32.mxu0 %v81_v58  ;;  %1209 = vmatpush3.bf16.msra.mxu0 %v1206_v16 }
  0x80   :  { %1050 = vmatmul.mubr.msk.f32.gmra.mrb[18].mxu1 %vm223_vm0, %v89_v59  ;;  %1211 = vmatprep.subr.bf16.mxu0 %v1210_v19 }
  0x81   :  { %1052 = vmatprep.mubr.msk.f32.mxu1 %vm223_vm0, %v96_v60  ;;  %1243 = vmatpush3.bf16.msra.mxu1 %v1206_v16 }
  0x82   :  { %533 = vmatmul.mubr.f32.gmra.mrb[20].mxu0 %v80_v61  ;;  %1236 = vmatprep.subr.bf16.mxu1 %v1210_v19 }
  0x83   :  { %537 = vmatprep.mubr.f32.mxu0 %v88_v62  ;;  %1213 = vmatpush3.bf16.msra.mxu0 %v1210_v19 }
  0x84   :  { %1053 = vmatmul.mubr.msk.f32.gmra.mrb[20].mxu1 %vm223_vm0, %v103_v63  ;;  %1215 = vmatprep.subr.bf16.mxu0 %v1214_v22 }
  0x85   :  { %1055 = vmatprep.mubr.msk.f32.mxu1 %vm223_vm0, %v110_v0  ;;  %1244 = vmatpush3.bf16.msra.mxu1 %v1210_v19 }
  0x86   :  { %538 = vmatmul.mubr.f32.gmra.mrb[22].mxu0 %v87_v1  ;;  %1237 = vmatprep.subr.bf16.mxu1 %v1214_v22 }
  0x87   :  { %542 = vmatprep.mubr.f32.mxu0 %v95_v2  ;;  %1217 = vmatpush3.bf16.msra.mxu0 %v1214_v22 }
  0x88   :  { %1056 = vmatmul.mubr.msk.f32.gmra.mrb[22].mxu1 %vm223_vm0, %v117_v3  ;;  %1219 = vmatprep.subr.bf16.mxu0 %v1218_v25 }
  0x89   :  { %1245 = vmatpush3.bf16.msra.mxu1 %v1214_v22 }
  0x8a   :  { %543 = vmatmul.mubr.f32.gmra.mrb[24].mxu0 %v94_v4  ;;  %1238 = vmatprep.subr.bf16.mxu1 %v1218_v25 }
  0x8b   :  { %547 = vmatprep.mubr.f32.mxu0 %v102_v5  ;;  %1221 = vmatpush3.bf16.msra.mxu0 %v1218_v25 }
  0x8c   :  { %1223 = vmatprep.subr.bf16.mxu0 %v1222_v28 }
  0x8d   :  { %1246 = vmatpush3.bf16.msra.mxu1 %v1218_v25 }
  0x8e   :  { %548 = vmatmul.mubr.f32.gmra.mrb[26].mxu0 %v101_v6  ;;  %1239 = vmatprep.subr.bf16.mxu1 %v1222_v28 }
  0x8f   :  { %552 = vmatprep.mubr.f32.mxu0 %v109_v7  ;;  %1225 = vmatpush3.bf16.msra.mxu0 %v1222_v28 }
  0x90   :  { %1227 = vmatprep.subr.bf16.mxu0 %v1226_v31 }
  0x91   :  { %1247 = vmatpush3.bf16.msra.mxu1 %v1222_v28 }
  0x92   :  { %553 = vmatmul.mubr.f32.gmra.mrb[28].mxu0 %v108_v8  ;;  %1240 = vmatprep.subr.bf16.mxu1 %v1226_v31 }
  0x93   :  { %557 = vmatprep.mubr.f32.mxu0 %v116_v9  ;;  %1229 = vmatpush3.bf16.msra.mxu0 %v1226_v31 }
  0x94   :  { %1231 = vmatprep.subr.bf16.mxu0 %v1230_v34 }
  0x95   :  { %1248 = vmatpush3.bf16.msra.mxu1 %v1226_v31 }
  0x96   :  { %558 = vmatmul.mubr.f32.gmra.mrb[30].mxu0 %v115_v10  ;;  %1241 = vmatprep.subr.bf16.mxu1 %v1230_v34 }
  0x97   :  { %1233 = vmatpush3.bf16.msra.mxu0 %v1230_v34 }
  0x99   :  { %1249 = vmatpush3.bf16.msra.mxu1 %v1230_v34 }
 0x12d   :  { %v872_v35 = vpop.f32.mrb[0].mxu0 }
 0x12e   :  { %v873_v37 = vpop.f32.mrb[1].mxu0 }
 0x12f   :  { %v928_v38 = vpop.f32.mrb[0].mxu1  ;;  %v874_v39 = vadd.f32 %v873_v37, %v872_v35 }
 0x130   :  { %v929_v40 = vpop.f32.mrb[1].mxu1 }
 0x131   :  { %v930_v41 = vadd.f32 %v929_v40, %v928_v38  ;;  %v315_v42 = vadd.f32 %v874_v39, %v830_v36  ;;  %v875_v43 = vpop.f32.mrb[2].mxu0 }
 0x132   :  { %v876_v44 = vpop.f32.mrb[3].mxu0 }
 0x133   :  { %v931_v45 = vpop.f32.mrb[2].mxu1  ;;  %v420_v46 = vadd.f32 %v930_v41, %v315_v42  ;;  %v877_v47 = vadd.f32 %v876_v44, %v875_v43 }
 0x134   :  { %v932_v48 = vpop.f32.mrb[3].mxu1 }
 0x135   :  { %v933_v49 = vadd.f32 %v932_v48, %v931_v45  ;;  %v320_v50 = vadd.f32 %v877_v47, %v830_v36  ;;  %v878_v51 = vpop.f32.mrb[4].mxu0 }
 0x136   :  { %v879_v52 = vpop.f32.mrb[5].mxu0 }
 0x137   :  { %v934_v53 = vpop.f32.mrb[4].mxu1  ;;  %v425_v54 = vadd.f32 %v933_v49, %v320_v50  ;;  %v880_v55 = vadd.f32 %v879_v52, %v878_v51 }
 0x138   :  { %v935_v56 = vpop.f32.mrb[5].mxu1 }
 0x139   :  { %v936_v57 = vadd.f32 %v935_v56, %v934_v53  ;;  %v325_v58 = vadd.f32 %v880_v55, %v830_v36  ;;  %v881_v59 = vpop.f32.mrb[6].mxu0 }
 0x13a   :  { %v882_v60 = vpop.f32.mrb[7].mxu0 }
 0x13b   :  { %v937_v61 = vpop.f32.mrb[6].mxu1  ;;  %v430_v62 = vadd.f32 %v936_v57, %v325_v58  ;;  %v883_v63 = vadd.f32 %v882_v60, %v881_v59 }
 0x13c   :  { %v938_v0 = vpop.f32.mrb[7].mxu1 }
 0x13d   :  { %v939_v1 = vadd.f32 %v938_v0, %v937_v61  ;;  %v330_v2 = vadd.f32 %v883_v63, %v830_v36  ;;  %v884_v3 = vpop.f32.mrb[8].mxu0 }
 0x13e   :  { %v885_v4 = vpop.f32.mrb[9].mxu0 }
 0x13f   :  { %v940_v5 = vpop.f32.mrb[8].mxu1  ;;  %v435_v6 = vadd.f32 %v939_v1, %v330_v2  ;;  %v886_v7 = vadd.f32 %v885_v4, %v884_v3 }
 0x140   :  { %v941_v8 = vpop.f32.mrb[9].mxu1 }
 0x141   :  { %v942_v9 = vadd.f32 %v941_v8, %v940_v5  ;;  %v335_v10 = vadd.f32 %v886_v7, %v830_v36  ;;  %v887_v11 = vpop.f32.mrb[10].mxu0 }
 0x142   :  { %v888_v12 = vpop.f32.mrb[11].mxu0 }
 0x143   :  { %v943_v13 = vpop.f32.mrb[10].mxu1  ;;  %v440_v14 = vadd.f32 %v942_v9, %v335_v10  ;;  %v889_v15 = vadd.f32 %v888_v12, %v887_v11 }
 0x144   :  { %v944_v16 = vpop.f32.mrb[11].mxu1 }
 0x145   :  { %v945_v17 = vadd.f32 %v944_v16, %v943_v13  ;;  %v340_v18 = vadd.f32 %v889_v15, %v830_v36  ;;  %v890_v19 = vpop.f32.mrb[12].mxu0 }
 0x146   :  { %v891_v20 = vpop.f32.mrb[13].mxu0 }
 0x147   :  { %v946_v21 = vpop.f32.mrb[12].mxu1  ;;  %v445_v22 = vadd.f32 %v945_v17, %v340_v18  ;;  %v892_v23 = vadd.f32 %v891_v20, %v890_v19 }
 0x148   :  { %v947_v24 = vpop.f32.mrb[13].mxu1 }
 0x149   :  { %v948_v25 = vadd.f32 %v947_v24, %v946_v21  ;;  %v345_v26 = vadd.f32 %v892_v23, %v830_v36  ;;  %v893_v27 = vpop.f32.mrb[14].mxu0 }
 0x14a   :  { %v894_v28 = vpop.f32.mrb[15].mxu0 }
 0x14b   :  { %v949_v29 = vpop.f32.mrb[14].mxu1  ;;  %v450_v30 = vadd.f32 %v948_v25, %v345_v26  ;;  %v895_v31 = vadd.f32 %v894_v28, %v893_v27 }
 0x14c   :  { %v950_v32 = vpop.f32.mrb[15].mxu1 }
 0x14d   :  { %v951_v33 = vadd.f32 %v950_v32, %v949_v29  ;;  %v350_v34 = vadd.f32 %v895_v31, %v830_v36  ;;  %v984_v35 = vpop.f32.mrb[16].mxu0 }
 0x14e   :  { %v985_v37 = vpop.f32.mrb[17].mxu0 }
 0x14f   :  { %v1048_v38 = vpop.f32.mrb[16].mxu1  ;;  %v455_v39 = vadd.f32 %v951_v33, %v350_v34  ;;  %v986_v40 = vadd.f32 %v985_v37, %v984_v35 }
 0x150   :  { %v629_v41 = vpop.f32.mrb[17].mxu1 }
 0x151   :  { %v987_v42 = vpop.f32.mrb[18].mxu0  ;;  %v525_v43 = vadd.f32 %v986_v40, %v420_v46 }
 0x152   :  { %v988_v44 = vpop.f32.mrb[19].mxu0 }
 0x153   :  { %v1051_v45 = vpop.f32.mrb[18].mxu1  ;;  %v989_v47 = vadd.f32 %v988_v44, %v987_v42  ;;  %v630_v48 = vadd.f32 %v629_v41, %v525_v43 }
 0x154   :  { %v639_v49 = vpop.f32.mrb[19].mxu1 }
 0x155   :  { %v530_v50 = vadd.f32 %v989_v47, %v425_v54  ;;  %v668_v51 = vmax.f32 %v630_v48, 0.0  ;;  %v990_v52 = vpop.f32.mrb[20].mxu0 }
 0x156   :  { %v991_v53 = vpop.f32.mrb[21].mxu0 }
 0x157   :  { %v1054_v55 = vpop.f32.mrb[20].mxu1  ;;  %v635_v56 = vadd.f32 %v1048_v38, %v530_v50  ;;  %v992_v36 = vadd.f32 %v991_v53, %v990_v52  ;;  %1090 = vmatprep.mubr.f32.mxu0 %v668_v51 }
 0x158   :  { %v649_v57 = vpop.f32.mrb[21].mxu1 }
 0x159   :  { %v669_v58 = vmax.f32 %v635_v56, 0.0  ;;  %v993_v59 = vpop.f32.mrb[22].mxu0  ;;  %v535_v60 = vadd.f32 %v992_v36, %v430_v62 }
 0x15a   :  { %v994_v61 = vpop.f32.mrb[23].mxu0 }
 0x15b   :  { %v1057_v63 = vpop.f32.mrb[22].mxu1  ;;  %v995_v46 = vadd.f32 %v994_v61, %v993_v59  ;;  %v640_v0 = vadd.f32 %v639_v49, %v535_v60  ;;  %1091 = vmatmul.mubr.f32.vlgmr.msra.gmra.mrb[32].mxu0 %v669_v58 }
 0x15c   :  { %v659_v1 = vpop.f32.mrb[23].mxu1 }
 0x15d   :  { %v540_v2 = vadd.f32 %v995_v46, %v435_v6  ;;  %v670_v3 = vmax.f32 %v640_v0, 0.0  ;;  %v996_v54 = vpop.f32.mrb[24].mxu0 }
 0x15e   :  { %v997_v4 = vpop.f32.mrb[25].mxu0 }
 0x15f   :  { %v998_v5 = vadd.f32 %v997_v4, %v996_v54  ;;  %1093 = vmatprep.mubr.f32.mxu0 %v670_v3  ;;  %v645_v7 = vadd.f32 %v1051_v45, %v540_v2 }
 0x161   :  { %v999_v8 = vpop.f32.mrb[26].mxu0  ;;  %v545_v9 = vadd.f32 %v998_v5, %v440_v14  ;;  %v671_v10 = vmax.f32 %v645_v7, 0.0 }
 0x162   :  { %v1000_v11 = vpop.f32.mrb[27].mxu0 }
 0x163   :  { %v1001_v12 = vadd.f32 %v1000_v11, %v999_v8  ;;  %v650_v13 = vadd.f32 %v649_v57, %v545_v9  ;;  %1094 = vmatmul.mubr.f32.gmra.mrb[34].mxu0 %v671_v10 }
 0x165   :  { %v550_v62 = vadd.f32 %v1001_v12, %v445_v22  ;;  %v672_v15 = vmax.f32 %v650_v13, 0.0  ;;  %v1002_v16 = vpop.f32.mrb[28].mxu0  ;;  %v839_v22 = vld [vmem:[%s1465_s4] ss:$0 sm:$0xff]  ;;  %s817_s4 = sshll.u32 %s1359_s10, 4  ;;  %s818_s4 = int_to_ptr.vmem [resolvable:$true] %s817_s4 }
 0x166   :  { %v1003_v17 = vpop.f32.mrb[29].mxu0  ;;  %s1324_s11 = scalar_lea.vmem %s818_s4, 1024  ;;  %p1329_p11 = scmp.lt.s32.totalorder %s818_s4, %s818_s4 }
 0x167   :  { %v655_v18 = vadd.f32 %v1054_v55, %v550_v62  ;;  %v1004_v19 = vadd.f32 %v1003_v17, %v1002_v16  ;;  %1096 = vmatprep.mubr.f32.mxu1 %v672_v15  ;;  %p1325_p10 = scmp.ne.s32.totalorder %s818_s4, %s1324_s11  ;;  %p1330_p12 = scmp.lt.s32.totalorder %s1324_s11, %s1324_s11 }
 0x169   :  { %v673_v6 = vmax.f32 %v655_v18, 0.0  ;;  %v1005_v20 = vpop.f32.mrb[30].mxu0  ;;  %v555_v21 = vadd.f32 %v1004_v19, %v450_v30  ;;  %p1331_p13 = por %p1330_p12, %p1329_p11 }
 0x16a   :  { %v1006_v23 = vpop.f32.mrb[31].mxu0 }
 0x16b   :  { %v1007_v24 = vadd.f32 %v1006_v23, %v1005_v20  ;;  %v660_v25 = vadd.f32 %v659_v1, %v555_v21  ;;  %1097 = vmatmul.mubr.f32.vlgmr.msra.gmra.mrb[24].mxu1 %v673_v6  ;;  %p1332_p0 = pnand %p1331_p13, %p1325_p10 }
 0x16d   :  { %v560_v14 = vadd.f32 %v1007_v24, %v455_v39  ;;  %v674_v26 = vmax.f32 %v660_v25, 0.0 }
 0x16f   :  { %1099 = vmatprep.mubr.f32.mxu1 %v674_v26  ;;  %v665_v27 = vadd.f32 %v1057_v63, %v560_v14 }
 0x171   :  { %v675_v28 = vmax.f32 %v665_v27, 0.0 }
 0x173   :  { %1100 = vmatmul.mubr.f32.gmra.mrb[26].mxu1 %v675_v28 }
 0x22e   :  { %v1092_v29 = vpop.f32.mrb[32].mxu0 }
 0x22f   :  { %v771_v31 = vadd.f32 %v1092_v29, %v839_v22  ;;  %v765_v32 = vpop.f32.mrb[33].mxu0 }
 0x230   :  { %v766_v33 = vadd.f32 %v839_v22, %v765_v32 }
 0x231   :  { %805 = vst [vmem:[#allocation8 + $0x8] sm:$0xff] %v771_v31 }
 0x232   :  { %804 = vst [vmem:[#allocation8] sm:$0xff] %v766_v33 }
 0x236   :  { %v1095_v30 = vpop.f32.mrb[34].mxu0 }
 0x237   :  { %v781_v34 = vadd.f32 %v1095_v30, %v839_v22  ;;  %v775_v35 = vpop.f32.mrb[35].mxu0 }
 0x238   :  { %v776_v37 = vadd.f32 %v839_v22, %v775_v35 }
 0x239   :  { %807 = vst [vmem:[#allocation8 + $0x18] sm:$0xff] %v781_v34 }
 0x23a   :  { %806 = vst [vmem:[#allocation8 + $0x10] sm:$0xff] %v776_v37 }
 0x23e   :  { %v1098_v38 = vpop.f32.mrb[24].mxu1 }
 0x23f   :  { %v791_v39 = vadd.f32 %v1098_v38, %v839_v22  ;;  %v785_v40 = vpop.f32.mrb[25].mxu1 }
 0x240   :  { %v786_v41 = vadd.f32 %v839_v22, %v785_v40 }
 0x241   :  { %809 = vst [vmem:[#allocation8 + $0x28] sm:$0xff] %v791_v39 }
 0x242   :  { %808 = vst [vmem:[#allocation8 + $0x20] sm:$0xff] %v786_v41 }
 0x246   :  { %v1101_v42 = vpop.f32.mrb[26].mxu1 }
 0x247   :  { %v801_v43 = vadd.f32 %v1101_v42, %v839_v22  ;;  %v795_v44 = vpop.f32.mrb[27].mxu1 }
 0x248   :  { %v796_v45 = vadd.f32 %v839_v22, %v795_v44 }
 0x249   :  { %811 = vst [vmem:[#allocation8 + $0x38] sm:$0xff] %v801_v43 }
 0x24a   :  { %810 = vst [vmem:[#allocation8 + $0x30] sm:$0xff] %v796_v45 }
 0x24b   :  { %1335 = shalt.err (!%p1332_p0)
}
 0x24c   :  { %s1336_s14 = scalar_lea.hbm %s1466_s5, 1024 }
 0x24d   :  { %p1337_p1 = scmp.ne.s32.totalorder %s1466_s5, %s1336_s14  ;;  %p1340_p2 = scmp.lt.u32.totalorder %s1336_s14, %s1466_s5 }
 0x24f   :  { %p1342_p3 = pnand %p1340_p2, %p1337_p1 }
 0x251   :  { %1345 = shalt.err (!%p1342_p3)
}
 0x252   :  { %823 = dma.vmem_to_hbm [thread:$0]  %s818_s4, 1024, %s1466_s5, [#allocation4], %s1353_s28, %s1353_s28, %s1354_s29  }
 0x253   :  { %1350 = dma.done.wait [#allocation4], 1024  }
 0x254   :  { %1351 = vsyncadd [#allocation4], 4294966272 }
 0x255   :  { %827 = vsyncpa [#allocation3], 1 }
 0x256   :  { %828 = vsyncpa [#allocation6], 1 }
 0x257   :  { %829 = vsyncpa [#allocation4], 1 }

</bundles_post_ra>
